<compile_context>
chip_gen: v7x
topology: tpu7x:2x2x1
jax: 0.10.0
libtpu: 0.0.40
codegen_flags: <defaults>
</compile_context>

<pallas_src>
import functools
import math

import jax
import jax.numpy as jnp
from jax.experimental import pallas as pl
from jax.experimental.pallas import tpu as pltpu


def _round_up(x, m):
    return ((x + m - 1) // m) * m


# ----------------------------------------------------------------------------
# Kernel 1: resident-weight linear  y = x @ W + b   (1x1 convs, fused heads)
#   grid = (M tiles,); the weight / bias use constant index maps so they are
#   DMA'd once and stay in VMEM; activations are cast to bf16 in-kernel.
# ----------------------------------------------------------------------------
def _linear_kernel(x_ref, w_ref, b_ref, o_ref):
    o_ref[...] = (jnp.dot(x_ref[...].astype(jnp.bfloat16), w_ref[...],
                          preferred_element_type=jnp.float32)
                  + b_ref[...]).astype(o_ref.dtype)


def pallas_linear(x2d, w, b, out_dtype=jnp.bfloat16, tm_max=512):
    """x2d: [M, K] (f32), w: [K, N] (bf16), b: [N] (f32) -> [M, N] out_dtype.

    The full-K weight stays resident in VMEM (all weights in this head are
    <= ~1 MB bf16).  TODO(synk): a K-reduction grid axis would be needed for
    fan-ins far beyond ResNet scale; not required here.
    """
    M, K = x2d.shape
    N = w.shape[1]
    Np = _round_up(N, 128)                       # lane-dense output stores
    tm = min(tm_max, _round_up(M, 8))
    Mp = _round_up(M, tm)

    xb = x2d if Mp == M else jnp.pad(x2d, ((0, Mp - M), (0, 0)))
    wb = w if Np == N else jnp.pad(w, ((0, 0), (0, Np - N)))
    wb = wb.astype(jnp.bfloat16)
    bb = (b if Np == N else jnp.pad(b, ((0, Np - N),)))
    bb = bb.reshape(1, Np).astype(jnp.float32)

    out = pl.pallas_call(
        _linear_kernel,
        out_shape=jax.ShapeDtypeStruct((Mp, Np), out_dtype),
        grid_spec=pltpu.PrefetchScalarGridSpec(
            num_scalar_prefetch=0,
            grid=(Mp // tm,),
            in_specs=[
                pl.BlockSpec((tm, K), lambda i: (i, 0)),
                pl.BlockSpec((K, Np), lambda i: (0, 0)),     # resident weight
                pl.BlockSpec((1, Np), lambda i: (0, 0)),
            ],
            out_specs=pl.BlockSpec((tm, Np), lambda i: (i, 0)),
        ),
        compiler_params=pltpu.CompilerParams(dimension_semantics=("parallel",)),
    )(xb, wb, bb)
    if Mp != M or Np != N:
        out = out[:M, :N]
    return out


# ----------------------------------------------------------------------------
# Kernel 2: fully fused audio path (single launch, audio stays in VMEM)
#   AVFuse audio projection -> audio_linear_first (kept) -> 4 x [temporal MHA
#   over T + residual + per-level audio Linear].  Output is the concatenation
#   [audio_first, audio_out] along the query axis: [bt, 2*n_p, C].
# ----------------------------------------------------------------------------
def _audio_path_kernel(x_ref, wav_ref, bav_ref, wf_ref, bf_ref,
                       qkvw_ref, qkvb_ref, ow_ref, ob_ref, lw_ref, lb_ref,
                       pool_ref, poolt_ref, o_ref, *, bs, T):
    bt, n_p, C = x_ref.shape
    n_levels = qkvw_ref.shape[0]
    wav = wav_ref[...]
    bav = bav_ref[...]
    wf = wf_ref[...]
    bf = bf_ref[...]
    pool = pool_ref[...]                               # [C, H] bf16
    poolt = poolt_ref[...]                             # [H, C] bf16

    def mm(a, w, b=None):
        y = jnp.dot(a.astype(jnp.bfloat16), w, preferred_element_type=jnp.float32)
        return y if b is None else y + b

    # AVFuse audio projection (stand-in) then audio_linear_first.
    a1 = [mm(x_ref[i], wav, bav) for i in range(bt)]   # fused audio, [n_p, C]
    first = [mm(a, wf, bf) for a in a1]

    cur = a1
    for lvl in range(n_levels):
        wqkv, bqkv = qkvw_ref[lvl], qkvb_ref[lvl]
        wo, bo = ow_ref[lvl], ob_ref[lvl]
        wl, bl = lw_ref[lvl], lb_ref[lvl]
        qkv = [mm(c, wqkv, bqkv) for c in cur]          # [n_p, 3C] f32
        q = [t[:, 0:C] for t in qkv]
        k = [t[:, C:2 * C] for t in qkv]
        v = [t[:, 2 * C:3 * C] for t in qkv]
        new = []
        for b in range(bs):
            for t1 in range(T):
                i1 = b * T + t1
                s = [mm(q[i1] * k[b * T + t2], pool) for t2 in range(T)]  # [n_p,H]
                m = s[0]
                for t2 in range(1, T):
                    m = jnp.maximum(m, s[t2])
                e = [jnp.exp(si - m) for si in s]
                den = e[0]
                for t2 in range(1, T):
                    den = den + e[t2]
                inv = pl.reciprocal(den, approx=False)
                acc = None
                for t2 in range(T):
                    pc = mm(e[t2] * inv, poolt)          # head prob -> channels
                    term = pc * v[b * T + t2]
                    acc = term if acc is None else acc + term
                y = mm(acc, wo, bo) + cur[i1]            # out proj + residual
                new.append(mm(y, wl, bl))                # per-level audio Linear
        cur = new

    for i in range(bt):
        o_ref[i] = jnp.concatenate([first[i], cur[i]], axis=0).astype(o_ref.dtype)


def pallas_audio_path(audio, ap, pool_p, bs, T):
    """audio: [bt, n_p, C] f32 -> [bt, 2*n_p, C] f32 (audio_first ++ audio_out)."""
    bt, n_p, C = audio.shape
    L = ap["qkv_w"].shape[0]
    H = pool_p["pool"].shape[1]
    kernel = functools.partial(_audio_path_kernel, bs=bs, T=T)
    return pl.pallas_call(
        kernel,
        out_shape=jax.ShapeDtypeStruct((bt, 2 * n_p, C), jnp.float32),
        grid_spec=pltpu.PrefetchScalarGridSpec(
            num_scalar_prefetch=0,
            grid=(1,),
            in_specs=[
                pl.BlockSpec((bt, n_p, C), lambda i: (0, 0, 0)),
                pl.BlockSpec((C, C), lambda i: (0, 0)),
                pl.BlockSpec((1, C), lambda i: (0, 0)),
                pl.BlockSpec((C, C), lambda i: (0, 0)),
                pl.BlockSpec((1, C), lambda i: (0, 0)),
                pl.BlockSpec((L, C, 3 * C), lambda i: (0, 0, 0)),
                pl.BlockSpec((L, 1, 3 * C), lambda i: (0, 0, 0)),
                pl.BlockSpec((L, C, C), lambda i: (0, 0, 0)),
                pl.BlockSpec((L, 1, C), lambda i: (0, 0, 0)),
                pl.BlockSpec((L, C, C), lambda i: (0, 0, 0)),
                pl.BlockSpec((L, 1, C), lambda i: (0, 0, 0)),
                pl.BlockSpec((C, H), lambda i: (0, 0)),
                pl.BlockSpec((H, C), lambda i: (0, 0)),
            ],
            out_specs=pl.BlockSpec((bt, 2 * n_p, C), lambda i: (0, 0, 0)),
        ),
        compiler_params=pltpu.CompilerParams(dimension_semantics=("arbitrary",)),
    )(audio, ap["w_av"], ap["b_av"], ap["w_first"], ap["b_first"],
      ap["qkv_w"], ap["qkv_b"], ap["o_w"], ap["o_b"], ap["lin_w"], ap["lin_b"],
      pool_p["pool"], pool_p["pool_t"])


# ----------------------------------------------------------------------------
# Kernel 3: multi-head self-attention over the time axis + residual (visual
#   stream stand-in for Block_cross_audio_visual, mode='self').
#   Block shape (1, T, ts, C), bf16 in/out.  Per query timestep: per-key-step
#   head-pool matmuls (no [ts, T*C] concats), f32 softmax, per-timestep
#   output writes.  Spatial tiles lead the grid (parallel on both axes).
# ----------------------------------------------------------------------------
def _time_attn_kernel(x_ref, wqkv_ref, bqkv_ref, wo_ref, bo_ref,
                      pool_ref, poolt_ref, o_ref, *, T):
    wqkv = wqkv_ref[...]
    bqkv = bqkv_ref[...]
    wo = wo_ref[...]
    bo = bo_ref[...]
    pool = pool_ref[...]                               # [C, H] bf16
    poolt = poolt_ref[...]                             # [H, C] bf16
    C = wo.shape[0]

    x_t = [x_ref[0, t] for t in range(T)]              # [ts, C] bf16
    qkv = [jnp.dot(x, wqkv, preferred_element_type=jnp.float32) + bqkv
           for x in x_t]                               # [ts, 3C] f32
    q = [t[:, 0:C] for t in qkv]                       # 1/sqrt(hd) folded into Wq,bq
    k = [t[:, C:2 * C] for t in qkv]
    v = [t[:, 2 * C:3 * C] for t in qkv]

    for t1 in range(T):
        s = [jnp.dot((q[t1] * k[t2]).astype(jnp.bfloat16), pool,
                     preferred_element_type=jnp.float32) for t2 in range(T)]
        m = s[0]
        for t2 in range(1, T):
            m = jnp.maximum(m, s[t2])
        e = [jnp.exp(si - m) for si in s]
        den = e[0]
        for t2 in range(1, T):
            den = den + e[t2]
        inv = pl.reciprocal(den, approx=False)
        acc = None
        for t2 in range(T):
            pc = jnp.dot((e[t2] * inv).astype(jnp.bfloat16), poolt,
                         preferred_element_type=jnp.float32)        # [ts, C]
            term = pc * v[t2]
            acc = term if acc is None else acc + term
        y = (jnp.dot(acc.astype(jnp.bfloat16), wo,
                     preferred_element_type=jnp.float32)
             + bo + x_t[t1].astype(jnp.float32))                    # residual
        o_ref[0, t1] = y.astype(o_ref.dtype)


def pallas_time_attn(x_seq, p, pool_p, ts_max=256):
    """x_seq: [B, T, S, C] bf16; MHA over axis T per (b, s) + residual -> bf16."""
    B, T, S, C = x_seq.shape
    H = pool_p["pool"].shape[1]
    ts = min(ts_max, _round_up(S, 8))
    Sp = _round_up(S, ts)
    xp = x_seq if Sp == S else jnp.pad(x_seq, ((0, 0), (0, 0), (0, Sp - S), (0, 0)))

    kernel = functools.partial(_time_attn_kernel, T=T)
    out = pl.pallas_call(
        kernel,
        out_shape=jax.ShapeDtypeStruct((B, T, Sp, C), x_seq.dtype),
        grid_spec=pltpu.PrefetchScalarGridSpec(
            num_scalar_prefetch=0,
            grid=(Sp // ts, B),                      # spatial tiles lead (v7x TCs)
            in_specs=[
                pl.BlockSpec((1, T, ts, C), lambda s, b: (b, 0, s, 0)),
                pl.BlockSpec((C, 3 * C), lambda s, b: (0, 0)),
                pl.BlockSpec((1, 3 * C), lambda s, b: (0, 0)),
                pl.BlockSpec((C, C), lambda s, b: (0, 0)),
                pl.BlockSpec((1, C), lambda s, b: (0, 0)),
                pl.BlockSpec((C, H), lambda s, b: (0, 0)),
                pl.BlockSpec((H, C), lambda s, b: (0, 0)),
            ],
            out_specs=pl.BlockSpec((1, T, ts, C), lambda s, b: (b, 0, s, 0)),
        ),
        compiler_params=pltpu.CompilerParams(
            dimension_semantics=("parallel", "parallel")),
    )(xp, p["w_qkv"], p["b_qkv"], p["w_o"], p["b_o"],
      pool_p["pool"], pool_p["pool_t"])
    return out if Sp == S else out[:, :, :S, :]


# ----------------------------------------------------------------------------
# Kernel 4: per-batch mask prediction on channels-last features
#   out[b, hw, q] = sum_c feat[b, hw, c] * embed_T[b, c, q]   (HW tiled,
#   lane-dense output, no in-kernel transpose of the big feature tile).
# ----------------------------------------------------------------------------
def _mask_matmul_kernel(mf_ref, me_ref, o_ref):
    o_ref[0] = jnp.dot(mf_ref[0], me_ref[0], preferred_element_type=jnp.float32)


def pallas_pred_masks(mask_embed, mask_feat_cl, thw_max=2048):
    """mask_embed: [B, Q, C] f32; mask_feat_cl: [B, HW, C] bf16 -> [B, Q, HW] f32."""
    B, Q, C = mask_embed.shape
    HW = mask_feat_cl.shape[1]
    Qp = _round_up(Q, 128)
    thw = min(thw_max, _round_up(HW, 128))
    HWp = _round_up(HW, thw)

    # Pre-transpose/pad the tiny embeddings so the big feature block is the
    # plain LHS of the matmul (no per-tile XLU transpose of [thw, C]).
    me_t = jnp.swapaxes(mask_embed, 1, 2).astype(jnp.bfloat16)        # [B, C, Q]
    if Qp != Q:
        me_t = jnp.pad(me_t, ((0, 0), (0, 0), (0, Qp - Q)))
    mf = mask_feat_cl.astype(jnp.bfloat16)
    if HWp != HW:
        mf = jnp.pad(mf, ((0, 0), (0, HWp - HW), (0, 0)))

    out = pl.pallas_call(
        _mask_matmul_kernel,
        out_shape=jax.ShapeDtypeStruct((B, HWp, Qp), jnp.float32),
        grid_spec=pltpu.PrefetchScalarGridSpec(
            num_scalar_prefetch=0,
            grid=(HWp // thw, B),                    # spatial tiles lead (v7x TCs)
            in_specs=[
                pl.BlockSpec((1, thw, C), lambda j, b: (b, j, 0)),
                pl.BlockSpec((1, C, Qp), lambda j, b: (b, 0, 0)),
            ],
            out_specs=pl.BlockSpec((1, thw, Qp), lambda j, b: (b, j, 0)),
        ),
        compiler_params=pltpu.CompilerParams(
            dimension_semantics=("parallel", "parallel")),
    )(mf, me_t)
    return jnp.swapaxes(out[:, :HW, :Q], 1, 2)       # [B, Q, HW]


# ----------------------------------------------------------------------------
# Parameter initialization (deterministic, synthetic).  All bf16 weight casts,
# fused-weight concatenations, head-pool matrices and the 1/sqrt(head_dim)
# fold are done ONCE here (not per launch).
# ----------------------------------------------------------------------------
def _normal(key, shape):
    return jax.random.normal(key, shape, jnp.float32) * 0.02


def _attn_params(key, c, num_heads):
    ks = jax.random.split(key, 4)
    hd = c // num_heads
    scale = 1.0 / math.sqrt(hd)
    wq, wk, wv, wo = (_normal(k, (c, c)) for k in ks)
    bq = jnp.zeros((c,), jnp.float32)
    bk = jnp.zeros((c,), jnp.float32)
    bv = jnp.zeros((c,), jnp.float32)
    # Score scale 1/sqrt(head_dim) folded into BOTH W_q and b_q.
    w_qkv = jnp.concatenate([wq * scale, wk, wv], axis=1).astype(jnp.bfloat16)
    b_qkv = jnp.concatenate([bq * scale, bk, bv]).reshape(1, 3 * c)
    return {"w_qkv": w_qkv, "b_qkv": b_qkv,
            "w_o": wo.astype(jnp.bfloat16), "b_o": jnp.zeros((1, c), jnp.float32)}


def init_params(key, feature_channels, conv_dim, num_classes, num_heads=8):
    c = conv_dim
    keys = iter(jax.random.split(key, 32))
    params = {}
    params["pix"] = {
        name: {"w": _normal(next(keys), (feature_channels[name], c)).astype(jnp.bfloat16),
               "b": jnp.zeros((c,), jnp.float32)}
        for name in ("res2", "res3", "res4", "res5")}

    aud_attn = [_attn_params(next(keys), c, num_heads) for _ in range(4)]
    params["audio"] = {
        "w_av": _normal(next(keys), (c, c)).astype(jnp.bfloat16),
        "b_av": jnp.zeros((1, c), jnp.float32),
        "w_first": _normal(next(keys), (c, c)).astype(jnp.bfloat16),
        "b_first": jnp.zeros((1, c), jnp.float32),
        "qkv_w": jnp.stack([a["w_qkv"] for a in aud_attn]),
        "qkv_b": jnp.stack([a["b_qkv"] for a in aud_attn]),
        "o_w": jnp.stack([a["w_o"] for a in aud_attn]),
        "o_b": jnp.stack([a["b_o"] for a in aud_attn]),
        "lin_w": jnp.stack([_normal(next(keys), (c, c)).astype(jnp.bfloat16)
                            for _ in range(4)]),
        "lin_b": jnp.zeros((4, 1, c), jnp.float32),
    }
    params["time_blocks"] = [_attn_params(next(keys), c, num_heads) for _ in range(4)]

    hd = c // num_heads
    pool = (jnp.arange(c)[:, None] // hd
            == jnp.arange(num_heads)[None, :]).astype(jnp.float32)   # [C, H]
    params["head_pool"] = {"pool": pool.astype(jnp.bfloat16),
                           "pool_t": pool.T.astype(jnp.bfloat16)}

    w_cls = _normal(next(keys), (c, num_classes + 1))
    w_me = _normal(next(keys), (c, c))
    params["head_w"] = jnp.concatenate([w_cls, w_me], axis=1).astype(jnp.bfloat16)
    params["head_b"] = jnp.zeros((num_classes + 1 + c,), jnp.float32)
    params["num_classes_p1"] = num_classes + 1
    return params


# ----------------------------------------------------------------------------
# MaskFormerHead.layers() forward (late-fusion, multi_scale_pixel_decoder path)
# ----------------------------------------------------------------------------
def maskformer_head_forward(params, features, audio_feature, frame_used):
    bt, n_p, c = audio_feature.shape
    bs = bt // frame_used
    T = frame_used

    # --- pixel decoder ------------------------------------------------------
    # TODO(synk): real pixel_decoder (MSDeformAttn FPN) is an external module;
    # stand-in: per-level 1x1 conv (resident-weight Pallas linear) to conv_dim,
    # kept channels-last and bf16 ([bs, T, H*W, C]) for the rest of the head.
    feats_cl = {}
    spatial = {}
    for name in ("res2", "res3", "res4", "res5"):
        f = features[name]                                   # [bt, Cin, H, W]
        _, cin, h, w = f.shape
        spatial[name] = (h, w)
        # Single NCHW -> channels-last layout change per level (XLA); the bf16
        # cast happens inside the kernel, padding only if shapes require it.
        x_cl = jnp.transpose(f, (0, 2, 3, 1)).reshape(bt * h * w, cin)
        y = pallas_linear(x_cl, params["pix"][name]["w"], params["pix"][name]["b"],
                          out_dtype=jnp.bfloat16)
        feats_cl[name] = y.reshape(bs, T, h * w, c)

    # --- fused audio path ----------------------------------------------------
    # TODO(synk): AVFuse + Block_cross_audio_visual (audio stream) are external
    # modules; stand-in: one kernel fusing the AVFuse audio projection,
    # audio_linear_first, 4 temporal self-attn blocks and the 4 per-level
    # audio Linears, keeping the tiny audio tensor resident in VMEM.
    audio_cat = pallas_audio_path(audio_feature, params["audio"],
                                  params["head_pool"], bs, T)   # [bt, 2*n_p, c]

    # --- per-level visual temporal attention ---------------------------------
    # TODO(synk): Block_cross_audio_visual (visual stream, mode='self') is an
    # external module; stand-in: multi-head self-attention over T + residual.
    for idx, name in enumerate(["res2", "res3", "res4", "res5"]):
        feats_cl[name] = pallas_time_attn(feats_cl[name], params["time_blocks"][idx],
                                          params["head_pool"])

    multi_scale_features = [feats_cl["res5"], feats_cl["res4"], feats_cl["res3"]]

    # --- transformer predictor -----------------------------------------------
    # TODO(synk): MultiScaleMaskedTransformerDecoder is an external module;
    # stand-in: fused class + mask-embed heads (single resident-weight linear)
    # and the per-batch lane-dense mask matmul against attended res2 features.
    qn = audio_cat.shape[1]
    ncls = params["num_classes_p1"]
    head = pallas_linear(audio_cat.reshape(bt * qn, c),
                         params["head_w"], params["head_b"], out_dtype=jnp.float32)
    pred_logits = head[:, :ncls].reshape(bt, qn, ncls)
    mask_embed = head[:, ncls:ncls + c].reshape(bt, qn, c)
    h2, w2 = spatial["res2"]
    pred_masks = pallas_pred_masks(mask_embed,
                                   feats_cl["res2"].reshape(bt, h2 * w2, c))
    pred_masks = pred_masks.reshape(bt, qn, h2, w2)
    _ = multi_scale_features  # would feed the real transformer decoder
    return {"pred_logits": pred_logits, "pred_masks": pred_masks}


# ----------------------------------------------------------------------------
if __name__ == "__main__":
    key = jax.random.PRNGKey(0)
    bs, frame_used = 1, 2
    bt = bs * frame_used
    conv_dim, num_heads, n_p, num_classes = 32, 8, 4, 3
    chans = {"res2": 8, "res3": 16, "res4": 32, "res5": 32}
    sizes = {"res2": 16, "res3": 8, "res4": 4, "res5": 4}

    kf, ka, kp = jax.random.split(key, 3)
    feat_keys = jax.random.split(kf, 4)
    features = {
        name: jax.random.normal(k, (bt, chans[name], sizes[name], sizes[name]),
                                jnp.float32)
        for k, name in zip(feat_keys, ["res2", "res3", "res4", "res5"])
    }
    audio = jax.random.normal(ka, (bt, n_p, conv_dim), jnp.float32)
    params = init_params(kp, chans, conv_dim, num_classes, num_heads)

    out = maskformer_head_forward(params, features, audio, frame_used)
    jax.tree_util.tree_map(jax.block_until_ready, out)
    assert out["pred_logits"].shape == (bt, 2 * n_p, num_classes + 1)
    assert out["pred_masks"].shape == (bt, 2 * n_p, sizes["res2"], sizes["res2"])
    print("KERNEL_OK")
</pallas_src>

<mosaic_0001>
module attributes {stable_mosaic.version = 11 : i64} {
  func.func @_linear_kernel(%arg0: i32, %arg1: memref<512x8xf32, #tpu.memory_space<vmem>>, %arg2: memref<8x128xbf16, #tpu.memory_space<vmem>>, %arg3: memref<1x128xf32, #tpu.memory_space<vmem>>, %arg4: memref<512x128xbf16, #tpu.memory_space<vmem>>) attributes {dimension_semantics = [#tpu.dimension_semantics<parallel>], iteration_bounds = array<i64: 1>, scalar_prefetch = 0 : i64, scratch_operands = 0 : i64, tpu.core_type = #tpu.core_type<tc>, window_params = [{transform_indices = @transform_0, window_bounds = array<i64: 512, 8>}, {pipeline_mode = #tpu.pipeline_mode<synchronous>, transform_indices = @transform_1, window_bounds = array<i64: 8, 128>}, {pipeline_mode = #tpu.pipeline_mode<synchronous>, transform_indices = @transform_2, window_bounds = array<i64: 1, 128>}, {transform_indices = @transform_3, window_bounds = array<i64: 512, 128>}]} {
    %c0 = arith.constant 0 : index
    %c0_0 = arith.constant 0 : index
    %0 = vector.load %arg1[%c0, %c0_0] : memref<512x8xf32, #tpu.memory_space<vmem>>, vector<512x8xf32>
    %1 = arith.truncf %0 : vector<512x8xf32> to vector<512x8xbf16>
    %c0_1 = arith.constant 0 : index
    %c0_2 = arith.constant 0 : index
    %2 = vector.load %arg2[%c0_1, %c0_2] : memref<8x128xbf16, #tpu.memory_space<vmem>>, vector<8x128xbf16>
    %cst = arith.constant dense<0.000000e+00> : vector<512x128xf32>
    %3 = tpu.matmul %1, %2, %cst {dimension_numbers = #tpu.dot_dimension_numbers<[1], [0], [0], [1], [0, 0, 1, 1], [], []>} : vector<512x8xbf16>, vector<8x128xbf16>, vector<512x128xf32> -> vector<512x128xf32>
    %c0_3 = arith.constant 0 : index
    %c0_4 = arith.constant 0 : index
    %4 = vector.load %arg3[%c0_3, %c0_4] : memref<1x128xf32, #tpu.memory_space<vmem>>, vector<1x128xf32>
    %5 = vector.broadcast %4 : vector<1x128xf32> to vector<512x128xf32>
    %6 = arith.addf %3, %5 : vector<512x128xf32>
    %7 = arith.truncf %6 : vector<512x128xf32> to vector<512x128xbf16>
    %c0_5 = arith.constant 0 : index
    %c0_6 = arith.constant 0 : index
    %8 = vector.load %arg4[%c0_5, %c0_6] : memref<512x128xbf16, #tpu.memory_space<vmem>>, vector<512x128xbf16>
    tpu.vector_store %arg4[%c0_5, %c0_6], %7 {strides = array<i32>} : memref<512x128xbf16, #tpu.memory_space<vmem>>, vector<512x128xbf16>,
    return
  }
  func.func @transform_0(%arg0: i32) -> (i32, i32) {
    %c0_i32 = arith.constant 0 : i32
    %c0_i32_0 = arith.constant 0 : i32
    return %arg0, %c0_i32 : i32, i32
  }
  func.func @transform_1(%arg0: i32) -> (i32, i32) {
    %c0_i32 = arith.constant 0 : i32
    %c0_i32_0 = arith.constant 0 : i32
    %c0_i32_1 = arith.constant 0 : i32
    return %c0_i32, %c0_i32_0 : i32, i32
  }
  func.func @transform_2(%arg0: i32) -> (i32, i32) {
    %c0_i32 = arith.constant 0 : i32
    %c0_i32_0 = arith.constant 0 : i32
    %c0_i32_1 = arith.constant 0 : i32
    return %c0_i32, %c0_i32_0 : i32, i32
  }
  func.func @transform_3(%arg0: i32) -> (i32, i32) {
    %c0_i32 = arith.constant 0 : i32
    %c0_i32_0 = arith.constant 0 : i32
    return %arg0, %c0_i32 : i32, i32
  }
}

</mosaic_0001>

<bundles_post_ra>
// kernel: tpu_custom_call.1
= control target key start
LH: loop header
LB: loop body
LE: loop exit
PB: predicated region body
PF: predicated region fallthrough
CT: control target
= control target key end

     0   :  { %vm217_vm0 = vcmask 1043456   ;;  %vm120_vm1 = vcmask 64512   ;;  %s1659_s0 = inlined_call_operand.vmem [shape: f32[512,8], index: 0, kind: input, shape index: {}]   ;;  %s1660_s1 = inlined_call_operand.vmem [shape: bf16[8,128], index: 1, kind: input, shape index: {}]   ;;  %s1661_s2 = inlined_call_operand.vmem [shape: f32[1,128], index: 2, kind: input, shape index: {}]   ;;  %s1662_s3 = inlined_call_operand.hbm [shape: bf16[512,128], index: 3, kind: output, shape index: {}]  }
   0x1   :  { %v112_v0 = vld [vmem:[%s1660_s1] sm:$0xf]  ;;  %v17_v2 = vld [vmem:[%s1659_s0 + $0x8] sm:$0xff]  ;;  %v18_v7 = vld [vmem:[%s1659_s0 + $0x10] sm:$0xff] }
   0x2   :  { %v16_v1 = vld [vmem:[%s1659_s0] sm:$0xff]  ;;  %1299 = vmatprep.subr.msk.bf16.mxu0 %vm217_vm0, %v112_v0  ;;  %1300 = vmatprep.subr.msk.bf16.mxu1 %vm217_vm0, %v112_v0  ;;  %v219_v3 = vsel %vm217_vm0, %v112_v0, 0  ;;  %v49_v6 = vld [vmem:[%s1659_s0 + $0x108] sm:$0xff]  ;;  %v19_v9 = vld [vmem:[%s1659_s0 + $0x18] sm:$0xff] }
   0x3   :  { %v80_v4 = vpack.c.bf16 %v17_v2, %v16_v1  ;;  %v48_v5 = vld [vmem:[%s1659_s0 + $0x100] sm:$0xff]  ;;  %1232 = vmatpush3.bf16.msra.mxu0 %v219_v3  ;;  %1298 = vmatpush3.bf16.msra.mxu1 %v219_v3  ;;  %v50_v10 = vld [vmem:[%s1659_s0 + $0x110] sm:$0xff]  ;;  %v51_v11 = vld [vmem:[%s1659_s0 + $0x118] sm:$0xff]  ;;  %v81_v12 = vpack.c.bf16 %v19_v9, %v18_v7 }
   0x4   :  { %v96_v8 = vpack.c.bf16 %v49_v6, %v48_v5  ;;  %v97_v13 = vpack.c.bf16 %v51_v11, %v50_v10  ;;  %v20_v14 = vld [vmem:[%s1659_s0 + $0x20] sm:$0xff]  ;;  %v21_v15 = vld [vmem:[%s1659_s0 + $0x28] sm:$0xff]  ;;  %v22_v20 = vld [vmem:[%s1659_s0 + $0x30] sm:$0xff] }
   0x5   :  { %1233 = vmatprep.mubr.msk.bf16.mxu0 %vm120_vm1, %v80_v4  ;;  %v52_v16 = vld [vmem:[%s1659_s0 + $0x120] sm:$0xff]  ;;  %v82_v17 = vpack.c.bf16 %v21_v15, %v20_v14  ;;  %v53_v18 = vld [vmem:[%s1659_s0 + $0x128] sm:$0xff]  ;;  %v23_v21 = vld [vmem:[%s1659_s0 + $0x38] sm:$0xff] }
   0x6   :  { %1265 = vmatprep.mubr.msk.bf16.mxu1 %vm120_vm1, %v96_v8  ;;  %1234 = vmatmul.mubr.msk.bf16.vlgmr.msra.gmra.mrb[0].mxu0 %vm120_vm1, %v81_v12  ;;  %v98_v19 = vpack.c.bf16 %v53_v18, %v52_v16  ;;  %v54_v22 = vld [vmem:[%s1659_s0 + $0x130] sm:$0xff]  ;;  %v55_v23 = vld [vmem:[%s1659_s0 + $0x138] sm:$0xff]  ;;  %v24_v24 = vld [vmem:[%s1659_s0 + $0x40] sm:$0xff]  ;;  %v83_v28 = vpack.c.bf16 %v23_v21, %v22_v20 }
   0x7   :  { %1266 = vmatmul.mubr.msk.bf16.vlgmr.msra.gmra.mrb[0].mxu1 %vm120_vm1, %v97_v13  ;;  %1237 = vmatprep.mubr.msk.bf16.mxu0 %vm120_vm1, %v82_v17  ;;  %v25_v25 = vld [vmem:[%s1659_s0 + $0x48] sm:$0xff]  ;;  %v56_v26 = vld [vmem:[%s1659_s0 + $0x140] sm:$0xff]  ;;  %v99_v29 = vpack.c.bf16 %v55_v23, %v54_v22  ;;  %v26_v32 = vld [vmem:[%s1659_s0 + $0x50] sm:$0xff] }
   0x8   :  { %1269 = vmatprep.mubr.msk.bf16.mxu1 %vm120_vm1, %v98_v19  ;;  %v57_v27 = vld [vmem:[%s1659_s0 + $0x148] sm:$0xff]  ;;  %v84_v30 = vpack.c.bf16 %v25_v25, %v24_v24  ;;  %v27_v33 = vld [vmem:[%s1659_s0 + $0x58] sm:$0xff]  ;;  %v58_v34 = vld [vmem:[%s1659_s0 + $0x150] sm:$0xff] }
   0x9   :  { %v100_v31 = vpack.c.bf16 %v57_v27, %v56_v26  ;;  %v59_v35 = vld [vmem:[%s1659_s0 + $0x158] sm:$0xff]  ;;  %v28_v36 = vld [vmem:[%s1659_s0 + $0x60] sm:$0xff]  ;;  %v29_v37 = vld [vmem:[%s1659_s0 + $0x68] sm:$0xff]  ;;  %v85_v40 = vpack.c.bf16 %v27_v33, %v26_v32 }
   0xa   :  { %v60_v38 = vld [vmem:[%s1659_s0 + $0x160] sm:$0xff]  ;;  %v61_v39 = vld [vmem:[%s1659_s0 + $0x168] sm:$0xff]  ;;  %v101_v41 = vpack.c.bf16 %v59_v35, %v58_v34  ;;  %v86_v42 = vpack.c.bf16 %v29_v37, %v28_v36  ;;  %v30_v44 = vld [vmem:[%s1659_s0 + $0x70] sm:$0xff] }
   0xb   :  { %v102_v43 = vpack.c.bf16 %v61_v39, %v60_v38  ;;  %v31_v45 = vld [vmem:[%s1659_s0 + $0x78] sm:$0xff] }
   0xe   :  { %1238 = vmatmul.mubr.msk.bf16.gmra.mrb[4].mxu0 %vm120_vm1, %v83_v28 }
   0xf   :  { %1270 = vmatmul.mubr.msk.bf16.gmra.mrb[4].mxu1 %vm120_vm1, %v99_v29  ;;  %1241 = vmatprep.mubr.msk.bf16.mxu0 %vm120_vm1, %v84_v30 }
  0x10   :  { %1273 = vmatprep.mubr.msk.bf16.mxu1 %vm120_vm1, %v100_v31 }
  0x16   :  { %1242 = vmatmul.mubr.msk.bf16.gmra.mrb[8].mxu0 %vm120_vm1, %v85_v40 }
  0x17   :  { %1274 = vmatmul.mubr.msk.bf16.gmra.mrb[8].mxu1 %vm120_vm1, %v101_v41 }
  0x18   :  { %8 = vsyncpa [#allocation3], 0  ;;  %1245 = vmatprep.mubr.msk.bf16.mxu0 %vm120_vm1, %v86_v42  ;;  %1277 = vmatprep.mubr.msk.bf16.mxu1 %vm120_vm1, %v102_v43  ;;  %v62_v46 = vld [vmem:[%s1659_s0 + $0x170] sm:$0xff]  ;;  %v63_v47 = vld [vmem:[%s1659_s0 + $0x178] sm:$0xff]  ;;  %v87_v52 = vpack.c.bf16 %v31_v45, %v30_v44 }
  0x19   :  { %v32_v48 = vld [vmem:[%s1659_s0 + $0x80] sm:$0xff]  ;;  %v33_v49 = vld [vmem:[%s1659_s0 + $0x88] sm:$0xff]  ;;  %v103_v53 = vpack.c.bf16 %v63_v47, %v62_v46  ;;  %v34_v56 = vld [vmem:[%s1659_s0 + $0x90] sm:$0xff] }
  0x1a   :  { %v64_v50 = vld [vmem:[%s1659_s0 + $0x180] sm:$0xff]  ;;  %v65_v51 = vld [vmem:[%s1659_s0 + $0x188] sm:$0xff]  ;;  %v88_v54 = vpack.c.bf16 %v33_v49, %v32_v48  ;;  %v35_v57 = vld [vmem:[%s1659_s0 + $0x98] sm:$0xff] }
  0x1b   :  { %v104_v55 = vpack.c.bf16 %v65_v51, %v64_v50  ;;  %v66_v58 = vld [vmem:[%s1659_s0 + $0x190] sm:$0xff]  ;;  %v67_v59 = vld [vmem:[%s1659_s0 + $0x198] sm:$0xff]  ;;  %v36_v60 = vld [vmem:[%s1659_s0 + $0xa0] sm:$0xff]  ;;  %v89_v0 = vpack.c.bf16 %v35_v57, %v34_v56 }
  0x1c   :  { %v37_v61 = vld [vmem:[%s1659_s0 + $0xa8] sm:$0xff]  ;;  %v68_v62 = vld [vmem:[%s1659_s0 + $0x1a0] sm:$0xff]  ;;  %v105_v1 = vpack.c.bf16 %v67_v59, %v66_v58  ;;  %v38_v4 = vld [vmem:[%s1659_s0 + $0xb0] sm:$0xff] }
  0x1d   :  { %v69_v63 = vld [vmem:[%s1659_s0 + $0x1a8] sm:$0xff]  ;;  %v90_v2 = vpack.c.bf16 %v37_v61, %v36_v60  ;;  %v39_v5 = vld [vmem:[%s1659_s0 + $0xb8] sm:$0xff]  ;;  %v70_v6 = vld [vmem:[%s1659_s0 + $0x1b0] sm:$0xff] }
  0x1e   :  { %1246 = vmatmul.mubr.msk.bf16.gmra.mrb[12].mxu0 %vm120_vm1, %v87_v52  ;;  %v106_v3 = vpack.c.bf16 %v69_v63, %v68_v62  ;;  %v71_v7 = vld [vmem:[%s1659_s0 + $0x1b8] sm:$0xff]  ;;  %v40_v8 = vld [vmem:[%s1659_s0 + $0xc0] sm:$0xff]  ;;  %v41_v9 = vld [vmem:[%s1659_s0 + $0xc8] sm:$0xff]  ;;  %v91_v12 = vpack.c.bf16 %v39_v5, %v38_v4 }
  0x1f   :  { %1278 = vmatmul.mubr.msk.bf16.gmra.mrb[12].mxu1 %vm120_vm1, %v103_v53  ;;  %1249 = vmatprep.mubr.msk.bf16.mxu0 %vm120_vm1, %v88_v54  ;;  %v72_v10 = vld [vmem:[%s1659_s0 + $0x1c0] sm:$0xff]  ;;  %v73_v11 = vld [vmem:[%s1659_s0 + $0x1c8] sm:$0xff]  ;;  %v107_v13 = vpack.c.bf16 %v71_v7, %v70_v6  ;;  %v92_v14 = vpack.c.bf16 %v41_v9, %v40_v8  ;;  %v42_v16 = vld [vmem:[%s1659_s0 + $0xd0] sm:$0xff] }
  0x20   :  { %1281 = vmatprep.mubr.msk.bf16.mxu1 %vm120_vm1, %v104_v55  ;;  %v108_v15 = vpack.c.bf16 %v73_v11, %v72_v10  ;;  %v43_v17 = vld [vmem:[%s1659_s0 + $0xd8] sm:$0xff]  ;;  %v74_v18 = vld [vmem:[%s1659_s0 + $0x1d0] sm:$0xff]  ;;  %v44_v20 = vld [vmem:[%s1659_s0 + $0xe0] sm:$0xff] }
  0x21   :  { %v75_v19 = vld [vmem:[%s1659_s0 + $0x1d8] sm:$0xff]  ;;  %v45_v21 = vld [vmem:[%s1659_s0 + $0xe8] sm:$0xff]  ;;  %v76_v22 = vld [vmem:[%s1659_s0 + $0x1e0] sm:$0xff]  ;;  %v93_v24 = vpack.c.bf16 %v43_v17, %v42_v16 }
  0x22   :  { %v77_v23 = vld [vmem:[%s1659_s0 + $0x1e8] sm:$0xff]  ;;  %v109_v25 = vpack.c.bf16 %v75_v19, %v74_v18  ;;  %v94_v26 = vpack.c.bf16 %v45_v21, %v44_v20  ;;  %v46_v28 = vld [vmem:[%s1659_s0 + $0xf0] sm:$0xff]  ;;  %v47_v29 = vld [vmem:[%s1659_s0 + $0xf8] sm:$0xff] }
  0x23   :  { %v110_v27 = vpack.c.bf16 %v77_v23, %v76_v22  ;;  %v78_v30 = vld [vmem:[%s1659_s0 + $0x1f0] sm:$0xff]  ;;  %v79_v31 = vld [vmem:[%s1659_s0 + $0x1f8] sm:$0xff]  ;;  %v95_v32 = vpack.c.bf16 %v47_v29, %v46_v28  ;;  %v1581_v35 = vld [vmem:[%s1661_s2] ss:$0 sm:$0xff]  ;;  %s1328_s0 = smov [#allocation2]  }
  0x24   :  { %v111_v33 = vpack.c.bf16 %v79_v31, %v78_v30  ;;  %s835_s2 = sshll.u32 %s1328_s0, 4  ;;  %s836_s2 = int_to_ptr.vmem [resolvable:$true] %s835_s2 }
  0x25   :  { %s1304_s4 = scalar_lea.vmem %s836_s2, 4096  ;;  %p1309_p1 = scmp.lt.s32.totalorder %s836_s2, %s836_s2 }
  0x26   :  { %1250 = vmatmul.mubr.msk.bf16.gmra.mrb[16].mxu0 %vm120_vm1, %v89_v0  ;;  %p1305_p0 = scmp.ne.s32.totalorder %s836_s2, %s1304_s4  ;;  %p1310_p2 = scmp.lt.s32.totalorder %s1304_s4, %s1304_s4 }
  0x27   :  { %1282 = vmatmul.mubr.msk.bf16.gmra.mrb[16].mxu1 %vm120_vm1, %v105_v1  ;;  %1253 = vmatprep.mubr.msk.bf16.mxu0 %vm120_vm1, %v90_v2 }
  0x28   :  { %1285 = vmatprep.mubr.msk.bf16.mxu1 %vm120_vm1, %v106_v3  ;;  %p1311_p3 = por %p1310_p2, %p1309_p1 }
  0x2a   :  { %p1312_p4 = pnand %p1311_p3, %p1305_p0 }
  0x2e   :  { %1254 = vmatmul.mubr.msk.bf16.gmra.mrb[20].mxu0 %vm120_vm1, %v91_v12 }
  0x2f   :  { %1286 = vmatmul.mubr.msk.bf16.gmra.mrb[20].mxu1 %vm120_vm1, %v107_v13  ;;  %1257 = vmatprep.mubr.msk.bf16.mxu0 %vm120_vm1, %v92_v14 }
  0x30   :  { %1289 = vmatprep.mubr.msk.bf16.mxu1 %vm120_vm1, %v108_v15 }
  0x36   :  { %1258 = vmatmul.mubr.msk.bf16.gmra.mrb[24].mxu0 %vm120_vm1, %v93_v24 }
  0x37   :  { %1290 = vmatmul.mubr.msk.bf16.gmra.mrb[24].mxu1 %vm120_vm1, %v109_v25  ;;  %1261 = vmatprep.mubr.msk.bf16.mxu0 %vm120_vm1, %v94_v26 }
  0x38   :  { %1293 = vmatprep.mubr.msk.bf16.mxu1 %vm120_vm1, %v110_v27 }
  0x3e   :  { %1262 = vmatmul.mubr.msk.bf16.gmra.mrb[28].mxu0 %vm120_vm1, %v95_v32 }
  0x3f   :  { %1294 = vmatmul.mubr.msk.bf16.gmra.mrb[28].mxu1 %vm120_vm1, %v111_v33 }
  0xd9   :  { %v1235_v34 = vpop.f32.mrb[0].mxu0 }
  0xda   :  { %v1267_v36 = vpop.f32.mrb[0].mxu1  ;;  %v255_v37 = vpop.f32.mrb[1].mxu0  ;;  %v264_v41 = vadd.f32 %v1235_v34, %v1581_v35 }
  0xdb   :  { %v383_v38 = vpop.f32.mrb[1].mxu1  ;;  %v1236_v39 = vpop.f32.mrb[2].mxu0  ;;  %v392_v42 = vadd.f32 %v1267_v36, %v1581_v35  ;;  %v256_v47 = vadd.f32 %v1581_v35, %v255_v37 }
  0xdc   :  { %v1268_v40 = vpop.f32.mrb[2].mxu1  ;;  %v267_v43 = vadd.f32 %v1236_v39, %v1581_v35  ;;  %v258_v45 = vpop.f32.mrb[3].mxu0  ;;  %v384_v48 = vadd.f32 %v1581_v35, %v383_v38 }
  0xdd   :  { %v395_v44 = vadd.f32 %v1268_v40, %v1581_v35  ;;  %v386_v46 = vpop.f32.mrb[3].mxu1  ;;  %v259_v49 = vadd.f32 %v1581_v35, %v258_v45 }
  0xde   :  { %v387_v50 = vadd.f32 %v1581_v35, %v386_v46  ;;  %v1015_v51 = vpack.c.bf16 %v267_v43, %v264_v41 }
  0xdf   :  { %v1095_v52 = vpack.c.bf16 %v395_v44, %v392_v42  ;;  %v1010_v53 = vpack.c.bf16 %v259_v49, %v256_v47 }
  0xe0   :  { %v1090_v54 = vpack.c.bf16 %v387_v50, %v384_v48  ;;  %1167 = vst [vmem:[#allocation2 + $0x8] sm:$0xff] %v1015_v51  }
  0xe1   :  { %1183 = vst [vmem:[#allocation2 + $0x88] sm:$0xff] %v1095_v52   ;;  %1011 = vst [vmem:[#allocation2] sm:$0xff] %v1010_v53   ;;  %v1239_v55 = vpop.f32.mrb[4].mxu0 }
  0xe2   :  { %1182 = vst [vmem:[#allocation2 + $0x80] sm:$0xff] %v1090_v54   ;;  %v1271_v56 = vpop.f32.mrb[4].mxu1  ;;  %v271_v57 = vpop.f32.mrb[5].mxu0  ;;  %v280_v61 = vadd.f32 %v1239_v55, %v1581_v35 }
  0xe3   :  { %v399_v58 = vpop.f32.mrb[5].mxu1  ;;  %v1240_v59 = vpop.f32.mrb[6].mxu0  ;;  %v408_v62 = vadd.f32 %v1271_v56, %v1581_v35  ;;  %v272_v3 = vadd.f32 %v1581_v35, %v271_v57 }
  0xe4   :  { %v1272_v60 = vpop.f32.mrb[6].mxu1  ;;  %v283_v63 = vadd.f32 %v1240_v59, %v1581_v35  ;;  %v274_v1 = vpop.f32.mrb[7].mxu0  ;;  %v400_v4 = vadd.f32 %v1581_v35, %v399_v58 }
  0xe5   :  { %v411_v0 = vadd.f32 %v1272_v60, %v1581_v35  ;;  %v402_v2 = vpop.f32.mrb[7].mxu1  ;;  %v275_v5 = vadd.f32 %v1581_v35, %v274_v1 }
  0xe6   :  { %v403_v6 = vadd.f32 %v1581_v35, %v402_v2  ;;  %v1025_v7 = vpack.c.bf16 %v283_v63, %v280_v61 }
  0xe7   :  { %v1105_v8 = vpack.c.bf16 %v411_v0, %v408_v62  ;;  %v1020_v9 = vpack.c.bf16 %v275_v5, %v272_v3 }
  0xe8   :  { %v1100_v10 = vpack.c.bf16 %v403_v6, %v400_v4  ;;  %1169 = vst [vmem:[#allocation2 + $0x18] sm:$0xff] %v1025_v7  }
  0xe9   :  { %1185 = vst [vmem:[#allocation2 + $0x98] sm:$0xff] %v1105_v8   ;;  %1168 = vst [vmem:[#allocation2 + $0x10] sm:$0xff] %v1020_v9   ;;  %v1243_v11 = vpop.f32.mrb[8].mxu0 }
  0xea   :  { %1184 = vst [vmem:[#allocation2 + $0x90] sm:$0xff] %v1100_v10   ;;  %v1275_v12 = vpop.f32.mrb[8].mxu1  ;;  %v287_v13 = vpop.f32.mrb[9].mxu0  ;;  %v296_v17 = vadd.f32 %v1243_v11, %v1581_v35 }
  0xeb   :  { %v415_v14 = vpop.f32.mrb[9].mxu1  ;;  %v1244_v15 = vpop.f32.mrb[10].mxu0  ;;  %v424_v18 = vadd.f32 %v1275_v12, %v1581_v35  ;;  %v288_v23 = vadd.f32 %v1581_v35, %v287_v13 }
  0xec   :  { %v1276_v16 = vpop.f32.mrb[10].mxu1  ;;  %v299_v19 = vadd.f32 %v1244_v15, %v1581_v35  ;;  %v290_v21 = vpop.f32.mrb[11].mxu0  ;;  %v416_v24 = vadd.f32 %v1581_v35, %v415_v14 }
  0xed   :  { %v427_v20 = vadd.f32 %v1276_v16, %v1581_v35  ;;  %v418_v22 = vpop.f32.mrb[11].mxu1  ;;  %v291_v25 = vadd.f32 %v1581_v35, %v290_v21 }
  0xee   :  { %v419_v26 = vadd.f32 %v1581_v35, %v418_v22  ;;  %v1035_v27 = vpack.c.bf16 %v299_v19, %v296_v17 }
  0xef   :  { %v1115_v28 = vpack.c.bf16 %v427_v20, %v424_v18  ;;  %v1030_v29 = vpack.c.bf16 %v291_v25, %v288_v23 }
  0xf0   :  { %v1110_v30 = vpack.c.bf16 %v419_v26, %v416_v24  ;;  %1171 = vst [vmem:[#allocation2 + $0x28] sm:$0xff] %v1035_v27  }
  0xf1   :  { %1187 = vst [vmem:[#allocation2 + $0xa8] sm:$0xff] %v1115_v28   ;;  %1170 = vst [vmem:[#allocation2 + $0x20] sm:$0xff] %v1030_v29   ;;  %v1247_v31 = vpop.f32.mrb[12].mxu0 }
  0xf2   :  { %1186 = vst [vmem:[#allocation2 + $0xa0] sm:$0xff] %v1110_v30   ;;  %v1279_v32 = vpop.f32.mrb[12].mxu1  ;;  %v303_v33 = vpop.f32.mrb[13].mxu0  ;;  %v312_v38 = vadd.f32 %v1247_v31, %v1581_v35 }
  0xf3   :  { %v431_v34 = vpop.f32.mrb[13].mxu1  ;;  %v1248_v36 = vpop.f32.mrb[14].mxu0  ;;  %v440_v39 = vadd.f32 %v1279_v32, %v1581_v35  ;;  %v304_v44 = vadd.f32 %v1581_v35, %v303_v33 }
  0xf4   :  { %v1280_v37 = vpop.f32.mrb[14].mxu1  ;;  %v315_v40 = vadd.f32 %v1248_v36, %v1581_v35  ;;  %v306_v42 = vpop.f32.mrb[15].mxu0  ;;  %v432_v45 = vadd.f32 %v1581_v35, %v431_v34 }
  0xf5   :  { %v443_v41 = vadd.f32 %v1280_v37, %v1581_v35  ;;  %v434_v43 = vpop.f32.mrb[15].mxu1  ;;  %v307_v46 = vadd.f32 %v1581_v35, %v306_v42 }
  0xf6   :  { %v435_v47 = vadd.f32 %v1581_v35, %v434_v43  ;;  %v1045_v48 = vpack.c.bf16 %v315_v40, %v312_v38 }
  0xf7   :  { %v1125_v49 = vpack.c.bf16 %v443_v41, %v440_v39  ;;  %v1040_v50 = vpack.c.bf16 %v307_v46, %v304_v44 }
  0xf8   :  { %v1120_v51 = vpack.c.bf16 %v435_v47, %v432_v45  ;;  %1173 = vst [vmem:[#allocation2 + $0x38] sm:$0xff] %v1045_v48  }
  0xf9   :  { %1189 = vst [vmem:[#allocation2 + $0xb8] sm:$0xff] %v1125_v49   ;;  %1172 = vst [vmem:[#allocation2 + $0x30] sm:$0xff] %v1040_v50   ;;  %v1251_v52 = vpop.f32.mrb[16].mxu0 }
  0xfa   :  { %1188 = vst [vmem:[#allocation2 + $0xb0] sm:$0xff] %v1120_v51   ;;  %v1283_v53 = vpop.f32.mrb[16].mxu1  ;;  %v319_v54 = vpop.f32.mrb[17].mxu0  ;;  %v328_v58 = vadd.f32 %v1251_v52, %v1581_v35 }
  0xfb   :  { %v447_v55 = vpop.f32.mrb[17].mxu1  ;;  %v1252_v56 = vpop.f32.mrb[18].mxu0  ;;  %v456_v59 = vadd.f32 %v1283_v53, %v1581_v35  ;;  %v320_v0 = vadd.f32 %v1581_v35, %v319_v54 }
  0xfc   :  { %v1284_v57 = vpop.f32.mrb[18].mxu1  ;;  %v331_v60 = vadd.f32 %v1252_v56, %v1581_v35  ;;  %v322_v62 = vpop.f32.mrb[19].mxu0  ;;  %v448_v1 = vadd.f32 %v1581_v35, %v447_v55 }
  0xfd   :  { %v459_v61 = vadd.f32 %v1284_v57, %v1581_v35  ;;  %v450_v63 = vpop.f32.mrb[19].mxu1  ;;  %v323_v2 = vadd.f32 %v1581_v35, %v322_v62 }
  0xfe   :  { %v451_v3 = vadd.f32 %v1581_v35, %v450_v63  ;;  %v1055_v4 = vpack.c.bf16 %v331_v60, %v328_v58 }
  0xff   :  { %v1135_v5 = vpack.c.bf16 %v459_v61, %v456_v59  ;;  %v1050_v6 = vpack.c.bf16 %v323_v2, %v320_v0 }
 0x100   :  { %v1130_v7 = vpack.c.bf16 %v451_v3, %v448_v1  ;;  %1175 = vst [vmem:[#allocation2 + $0x48] sm:$0xff] %v1055_v4  }
 0x101   :  { %1191 = vst [vmem:[#allocation2 + $0xc8] sm:$0xff] %v1135_v5   ;;  %1174 = vst [vmem:[#allocation2 + $0x40] sm:$0xff] %v1050_v6   ;;  %v1255_v8 = vpop.f32.mrb[20].mxu0 }
 0x102   :  { %1190 = vst [vmem:[#allocation2 + $0xc0] sm:$0xff] %v1130_v7   ;;  %v1287_v9 = vpop.f32.mrb[20].mxu1  ;;  %v335_v10 = vpop.f32.mrb[21].mxu0  ;;  %v344_v14 = vadd.f32 %v1255_v8, %v1581_v35 }
 0x103   :  { %v463_v11 = vpop.f32.mrb[21].mxu1  ;;  %v1256_v12 = vpop.f32.mrb[22].mxu0  ;;  %v472_v15 = vadd.f32 %v1287_v9, %v1581_v35  ;;  %v336_v20 = vadd.f32 %v1581_v35, %v335_v10 }
 0x104   :  { %v1288_v13 = vpop.f32.mrb[22].mxu1  ;;  %v347_v16 = vadd.f32 %v1256_v12, %v1581_v35  ;;  %v338_v18 = vpop.f32.mrb[23].mxu0  ;;  %v464_v21 = vadd.f32 %v1581_v35, %v463_v11 }
 0x105   :  { %v475_v17 = vadd.f32 %v1288_v13, %v1581_v35  ;;  %v466_v19 = vpop.f32.mrb[23].mxu1  ;;  %v339_v22 = vadd.f32 %v1581_v35, %v338_v18 }
 0x106   :  { %v467_v23 = vadd.f32 %v1581_v35, %v466_v19  ;;  %v1065_v24 = vpack.c.bf16 %v347_v16, %v344_v14 }
 0x107   :  { %v1145_v25 = vpack.c.bf16 %v475_v17, %v472_v15  ;;  %v1060_v26 = vpack.c.bf16 %v339_v22, %v336_v20 }
 0x108   :  { %v1140_v27 = vpack.c.bf16 %v467_v23, %v464_v21  ;;  %1177 = vst [vmem:[#allocation2 + $0x58] sm:$0xff] %v1065_v24  }
 0x109   :  { %1193 = vst [vmem:[#allocation2 + $0xd8] sm:$0xff] %v1145_v25   ;;  %1176 = vst [vmem:[#allocation2 + $0x50] sm:$0xff] %v1060_v26   ;;  %v1259_v28 = vpop.f32.mrb[24].mxu0 }
 0x10a   :  { %1192 = vst [vmem:[#allocation2 + $0xd0] sm:$0xff] %v1140_v27   ;;  %v1291_v29 = vpop.f32.mrb[24].mxu1  ;;  %v351_v30 = vpop.f32.mrb[25].mxu0  ;;  %v360_v34 = vadd.f32 %v1259_v28, %v1581_v35 }
 0x10b   :  { %v479_v31 = vpop.f32.mrb[25].mxu1  ;;  %v1260_v32 = vpop.f32.mrb[26].mxu0  ;;  %v488_v36 = vadd.f32 %v1291_v29, %v1581_v35  ;;  %v352_v41 = vadd.f32 %v1581_v35, %v351_v30 }
 0x10c   :  { %v1292_v33 = vpop.f32.mrb[26].mxu1  ;;  %v363_v37 = vadd.f32 %v1260_v32, %v1581_v35  ;;  %v354_v39 = vpop.f32.mrb[27].mxu0  ;;  %v480_v42 = vadd.f32 %v1581_v35, %v479_v31 }
 0x10d   :  { %v491_v38 = vadd.f32 %v1292_v33, %v1581_v35  ;;  %v482_v40 = vpop.f32.mrb[27].mxu1  ;;  %v355_v43 = vadd.f32 %v1581_v35, %v354_v39 }
 0x10e   :  { %v483_v44 = vadd.f32 %v1581_v35, %v482_v40  ;;  %v1075_v45 = vpack.c.bf16 %v363_v37, %v360_v34 }
 0x10f   :  { %v1155_v46 = vpack.c.bf16 %v491_v38, %v488_v36  ;;  %v1070_v47 = vpack.c.bf16 %v355_v43, %v352_v41 }
 0x110   :  { %v1150_v48 = vpack.c.bf16 %v483_v44, %v480_v42  ;;  %1179 = vst [vmem:[#allocation2 + $0x68] sm:$0xff] %v1075_v45  }
 0x111   :  { %1195 = vst [vmem:[#allocation2 + $0xe8] sm:$0xff] %v1155_v46   ;;  %1178 = vst [vmem:[#allocation2 + $0x60] sm:$0xff] %v1070_v47   ;;  %v1263_v49 = vpop.f32.mrb[28].mxu0 }
 0x112   :  { %1194 = vst [vmem:[#allocation2 + $0xe0] sm:$0xff] %v1150_v48   ;;  %v1295_v50 = vpop.f32.mrb[28].mxu1  ;;  %v367_v51 = vpop.f32.mrb[29].mxu0  ;;  %v376_v55 = vadd.f32 %v1263_v49, %v1581_v35 }
 0x113   :  { %v495_v52 = vpop.f32.mrb[29].mxu1  ;;  %v1264_v53 = vpop.f32.mrb[30].mxu0  ;;  %v504_v56 = vadd.f32 %v1295_v50, %v1581_v35  ;;  %v368_v61 = vadd.f32 %v1581_v35, %v367_v51 }
 0x114   :  { %v1296_v54 = vpop.f32.mrb[30].mxu1  ;;  %v379_v57 = vadd.f32 %v1264_v53, %v1581_v35  ;;  %v370_v59 = vpop.f32.mrb[31].mxu0  ;;  %v496_v62 = vadd.f32 %v1581_v35, %v495_v52 }
 0x115   :  { %v507_v58 = vadd.f32 %v1296_v54, %v1581_v35  ;;  %v498_v60 = vpop.f32.mrb[31].mxu1  ;;  %v371_v63 = vadd.f32 %v1581_v35, %v370_v59 }
 0x116   :  { %v499_v0 = vadd.f32 %v1581_v35, %v498_v60  ;;  %v1085_v1 = vpack.c.bf16 %v379_v57, %v376_v55 }
 0x117   :  { %v1165_v2 = vpack.c.bf16 %v507_v58, %v504_v56  ;;  %v1080_v3 = vpack.c.bf16 %v371_v63, %v368_v61 }
 0x118   :  { %v1160_v4 = vpack.c.bf16 %v499_v0, %v496_v62  ;;  %1181 = vst [vmem:[#allocation2 + $0x78] sm:$0xff] %v1085_v1  }
 0x119   :  { %1197 = vst [vmem:[#allocation2 + $0xf8] sm:$0xff] %v1165_v2   ;;  %1180 = vst [vmem:[#allocation2 + $0x70] sm:$0xff] %v1080_v3  }
 0x11a   :  { %1196 = vst [vmem:[#allocation2 + $0xf0] sm:$0xff] %v1160_v4  }
 0x11b   :  { %1315 = shalt.err (!%p1312_p4)
}
 0x11c   :  { %s1316_s7 = scalar_lea.hbm %s1662_s3, 4096 }
 0x11d   :  { %p1317_p5 = scmp.ne.s32.totalorder %s1662_s3, %s1316_s7  ;;  %p1320_p6 = scmp.lt.u32.totalorder %s1316_s7, %s1662_s3 }
 0x11f   :  { %p1322_p7 = pnand %p1320_p6, %p1317_p5 }
 0x121   :  { %1325 = shalt.err (!%p1322_p7)
}
 0x122   :  { %s1329_s12 = smov 64   ;;  %s1330_s13 = smov 4  }
 0x123   :  { %841 = dma.vmem_to_hbm [thread:$0]  %s836_s2, 4096, %s1662_s3, [#allocation3], %s1329_s12, %s1329_s12, %s1330_s13  }
 0x124   :  { %1326 = dma.done.wait [#allocation3], 4096  }
 0x125   :  { %1327 = vsyncadd [#allocation3], 4294963200 }
 0x126   :  { %845 = vsyncpa [#allocation3], 1 }

</bundles_post_ra>
